<compile_context>
chip_gen: v6e
topology: v6e:2x2x1
jax: 0.10.0
libtpu: 0.0.40
codegen_flags: <defaults>
</compile_context>

<pallas_src>
import functools
import math

import jax
import jax.numpy as jnp
from jax.experimental import pallas as pl
from jax.experimental.pallas import tpu as pltpu


def _round_up(x, m):
    return ((x + m - 1) // m) * m


def _gelu_exact(x):
    # PyTorch nn.GELU default = exact erf formulation (computed in f32 here).
    return 0.5 * x * (1.0 + jax.lax.erf(x * (1.0 / jnp.sqrt(2.0)).astype(x.dtype)))


def _gelu_tanh(x):
    # Optional tanh approximation (routes through EUP; useful if VALU-bound on v5e).
    c = jnp.sqrt(2.0 / jnp.pi).astype(x.dtype)
    return 0.5 * x * (1.0 + jnp.tanh(c * (x + 0.044715 * x * x * x)))


def _mlp_kernel(x_ref, w1_ref, b1_ref, w2_ref, b2_ref, o_ref, acc_ref, *, approx_gelu):
    # grid = (token tiles [parallel], hidden-dim tiles [arbitrary / reduction])
    h_idx = pl.program_id(1)

    @pl.when(h_idx == 0)
    def _init():
        acc_ref[...] = jnp.zeros_like(acc_ref)

    x = x_ref[...]                                     # (tm, D_in_p)  compute dtype
    # fc1 (MXU, f32 accumulation) + bias + GELU in f32
    h = jnp.dot(x, w1_ref[...], preferred_element_type=jnp.float32)
    h = h + b1_ref[...]                                # b1 kept in f32, broadcasts (1, th)
    h = _gelu_tanh(h) if approx_gelu else _gelu_exact(h)
    # dropout p=0.0 -> identity
    # fc2 partial product for this H-block, accumulated in f32 VMEM scratch
    acc_ref[...] += jnp.dot(h.astype(w2_ref.dtype), w2_ref[...],
                            preferred_element_type=jnp.float32)

    @pl.when(h_idx == pl.num_programs(1) - 1)
    def _finalize():
        o_ref[...] = (acc_ref[...] + b2_ref[...]).astype(o_ref.dtype)


def mlp_pallas(x, w1, b1, w2, b2, *, tm=256, th=512,
               compute_dtype=jnp.bfloat16, approx_gelu=False,
               vmem_limit_bytes=64 * 1024 * 1024):
    """x: (B, N, D_in) -> (B, N, D_out). w1: (D_in, H), w2: (H, D_out) (transposed vs nn.Linear)."""
    orig_dtype = x.dtype
    B, N, D_in = x.shape
    H = w1.shape[1]
    D_out = w2.shape[1]
    M = B * N

    # Lane-dense padding: all feature axes to multiples of 128.
    D_in_p = _round_up(D_in, 128)
    D_out_p = _round_up(D_out, 128)
    th_eff = min(_round_up(th, 128), _round_up(H, 128))
    H_p = _round_up(H, th_eff)

    # Token tiling: round M up, no divisibility requirement on (B, N).
    # (On v7x, prefer an even number of token tiles so both TensorCores stay busy.)
    tm_eff = min(_round_up(tm, 8), _round_up(M, 8))
    M_p = _round_up(M, tm_eff)

    # Zero padding is exact: padded D_in columns / H rows of w2 contribute 0,
    # padded H columns have b1=0 -> gelu(0)=0, padded output columns are sliced off.
    x2 = jnp.pad(x.reshape(M, D_in).astype(compute_dtype),
                 ((0, M_p - M), (0, D_in_p - D_in)))
    w1_p = jnp.pad(w1.astype(compute_dtype), ((0, D_in_p - D_in), (0, H_p - H)))
    w2_p = jnp.pad(w2.astype(compute_dtype), ((0, H_p - H), (0, D_out_p - D_out)))
    b1_p = jnp.pad(b1.astype(jnp.float32), ((0, H_p - H),)).reshape(1, H_p)
    b2_p = jnp.pad(b2.astype(jnp.float32), ((0, D_out_p - D_out),)).reshape(1, D_out_p)

    grid = (M_p // tm_eff, H_p // th_eff)

    itemsize = jnp.dtype(compute_dtype).itemsize
    cost = pl.CostEstimate(
        flops=2 * M_p * H_p * (D_in_p + D_out_p),
        transcendentals=M_p * H_p,
        bytes_accessed=(M_p * D_in_p + D_in_p * H_p + H_p * D_out_p) * itemsize
        + (H_p + D_out_p) * 4
        + M_p * D_out_p * jnp.dtype(orig_dtype).itemsize,
    )

    kernel = functools.partial(_mlp_kernel, approx_gelu=approx_gelu)

    out2 = pl.pallas_call(
        kernel,
        out_shape=jax.ShapeDtypeStruct((M_p, D_out_p), orig_dtype),
        grid_spec=pltpu.PrefetchScalarGridSpec(
            num_scalar_prefetch=0,
            grid=grid,
            in_specs=[
                pl.BlockSpec((tm_eff, D_in_p), lambda i, h: (i, 0)),   # x tile (constant over h)
                pl.BlockSpec((D_in_p, th_eff), lambda i, h: (0, h)),   # w1 H-block
                pl.BlockSpec((1, th_eff), lambda i, h: (0, h)),        # b1 H-block (f32)
                pl.BlockSpec((th_eff, D_out_p), lambda i, h: (h, 0)),  # w2 H-block
                pl.BlockSpec((1, D_out_p), lambda i, h: (0, 0)),       # b2 (f32, resident)
            ],
            out_specs=pl.BlockSpec((tm_eff, D_out_p), lambda i, h: (i, 0)),
            scratch_shapes=[pltpu.VMEM((tm_eff, D_out_p), jnp.float32)],
        ),
        compiler_params=pltpu.CompilerParams(
            dimension_semantics=("parallel", "arbitrary"),
            vmem_limit_bytes=vmem_limit_bytes,
        ),
        cost_estimate=cost,
    )(x2, w1_p, b1_p, w2_p, b2_p)

    return out2[:M, :D_out].reshape(B, N, D_out)


def init_linear_params(key, fan_in, fan_out, dtype=jnp.float32):
    # Deterministic init mirroring nn.Linear's kaiming-uniform / uniform-bias scheme.
    kw, kb = jax.random.split(key)
    bound_w = math.sqrt(1.0 / fan_in) * math.sqrt(3.0)
    w = jax.random.uniform(kw, (fan_in, fan_out), dtype, -bound_w, bound_w)
    bound_b = 1.0 / math.sqrt(fan_in)
    b = jax.random.uniform(kb, (fan_out,), dtype, -bound_b, bound_b)
    return w, b


def mlp_reference_f32(x, w1, b1, w2, b2):
    h = jnp.einsum("bnd,dh->bnh", x, w1) + b1
    h = 0.5 * h * (1.0 + jax.lax.erf(h / jnp.sqrt(2.0)))
    return jnp.einsum("bnh,ho->bno", h, w2) + b2


def mlp_reference_mixed(x, w1, b1, w2, b2, compute_dtype):
    # Emulates the kernel's mixed precision: bf16 matmul inputs, f32 accum / bias / GELU.
    xc = x.astype(compute_dtype)
    h = jnp.einsum("bnd,dh->bnh", xc, w1.astype(compute_dtype),
                   preferred_element_type=jnp.float32) + b1
    h = 0.5 * h * (1.0 + jax.lax.erf(h / jnp.sqrt(2.0)))
    o = jnp.einsum("bnh,ho->bno", h.astype(compute_dtype), w2.astype(compute_dtype),
                   preferred_element_type=jnp.float32) + b2
    return o.astype(x.dtype)


if __name__ == "__main__":
    key = jax.random.PRNGKey(0)
    k_x, k_fc1, k_fc2 = jax.random.split(key, 3)

    B, N = 2, 97            # M = 194 tokens -> exercises the non-divisible-M padding path
    in_features = 32
    hidden_features = 64
    out_features = 32

    x = jax.random.normal(k_x, (B, N, in_features), jnp.float32)
    w1, b1 = init_linear_params(k_fc1, in_features, hidden_features)
    w2, b2 = init_linear_params(k_fc2, hidden_features, out_features)

    out = mlp_pallas(x, w1, b1, w2, b2)
    out = jax.block_until_ready(out)
    assert out.shape == (B, N, out_features)

    # Tight check vs a mixed-precision (bf16 matmul inputs, f32 accum) reference.
    ref_mixed = mlp_reference_mixed(x, w1, b1, w2, b2, jnp.bfloat16)
    assert jnp.allclose(out, ref_mixed, atol=1e-2, rtol=1e-2), "mismatch vs mixed-precision reference"

    # Loose check vs the full-f32 module semantics (bf16 compute tolerance).
    ref_f32 = mlp_reference_f32(x, w1, b1, w2, b2)
    assert jnp.allclose(out, ref_f32, atol=1e-1, rtol=1e-1), "mismatch vs f32 reference"

    print("KERNEL_OK")
</pallas_src>

<mosaic_0001>
module attributes {stable_mosaic.version = 11 : i64} {
  func.func @_mlp_kernel(%arg0: i32, %arg1: i32, %arg2: memref<200x128xbf16, #tpu.memory_space<vmem>>, %arg3: memref<128x128xbf16, #tpu.memory_space<vmem>>, %arg4: memref<1x128xf32, #tpu.memory_space<vmem>>, %arg5: memref<128x128xbf16, #tpu.memory_space<vmem>>, %arg6: memref<1x128xf32, #tpu.memory_space<vmem>>, %arg7: memref<200x128xf32, #tpu.memory_space<vmem>>, %arg8: memref<200x128xf32, #tpu.memory_space<vmem>>) attributes {dimension_semantics = [#tpu.dimension_semantics<parallel>, #tpu.dimension_semantics<arbitrary>], iteration_bounds = array<i64: 1, 1>, scalar_prefetch = 0 : i64, scratch_operands = 1 : i64, tpu.core_type = #tpu.core_type<tc>, window_params = [{transform_indices = @transform_0, window_bounds = array<i64: 200, 128>}, {transform_indices = @transform_1, window_bounds = array<i64: 128, 128>}, {transform_indices = @transform_2, window_bounds = array<i64: 1, 128>}, {transform_indices = @transform_3, window_bounds = array<i64: 128, 128>}, {pipeline_mode = #tpu.pipeline_mode<synchronous>, transform_indices = @transform_4, window_bounds = array<i64: 1, 128>}, {transform_indices = @transform_5, window_bounds = array<i64: 200, 128>}]} {
    %c0_i32 = arith.constant 0 : i32
    %0 = arith.cmpi eq, %arg1, %c0_i32 : i32
    %1 = arith.extui %0 : i1 to i32
    %c0_i32_0 = arith.constant 0 : i32
    %2 = arith.cmpi ne, %1, %c0_i32_0 : i32
    scf.if %2 {
      %cst_19 = arith.constant 0.000000e+00 : f32
      %28 = vector.broadcast %cst_19 : f32 to vector<200x128xf32>
      %c0_20 = arith.constant 0 : index
      %c0_21 = arith.constant 0 : index
      %29 = vector.load %arg8[%c0_20, %c0_21] : memref<200x128xf32, #tpu.memory_space<vmem>>, vector<200x128xf32>
      tpu.vector_store %arg8[%c0_20, %c0_21], %28 {strides = array<i32>} : memref<200x128xf32, #tpu.memory_space<vmem>>, vector<200x128xf32>,
    } else {
    }
    %c0 = arith.constant 0 : index
    %c0_1 = arith.constant 0 : index
    %3 = vector.load %arg2[%c0, %c0_1] : memref<200x128xbf16, #tpu.memory_space<vmem>>, vector<200x128xbf16>
    %c0_2 = arith.constant 0 : index
    %c0_3 = arith.constant 0 : index
    %4 = vector.load %arg3[%c0_2, %c0_3] : memref<128x128xbf16, #tpu.memory_space<vmem>>, vector<128x128xbf16>
    %cst = arith.constant dense<0.000000e+00> : vector<200x128xf32>
    %5 = tpu.matmul %3, %4, %cst {dimension_numbers = #tpu.dot_dimension_numbers<[1], [0], [0], [1], [0, 0, 1, 1], [], []>} : vector<200x128xbf16>, vector<128x128xbf16>, vector<200x128xf32> -> vector<200x128xf32>
    %c0_4 = arith.constant 0 : index
    %c0_5 = arith.constant 0 : index
    %6 = vector.load %arg4[%c0_4, %c0_5] : memref<1x128xf32, #tpu.memory_space<vmem>>, vector<1x128xf32>
    %7 = vector.broadcast %6 : vector<1x128xf32> to vector<200x128xf32>
    %8 = arith.addf %5, %7 : vector<200x128xf32>
    %cst_6 = arith.constant 5.000000e-01 : f32
    %9 = vector.broadcast %cst_6 : f32 to vector<200x128xf32>
    %10 = arith.mulf %9, %8 : vector<200x128xf32>
    %cst_7 = arith.constant 2.000000e+00 : f32
    %11 = math.sqrt %cst_7 : f32
    %cst_8 = arith.constant 1.000000e+00 : f32
    %12 = arith.divf %cst_8, %11 : f32
    %13 = vector.broadcast %12 : f32 to vector<200x128xf32>
    %14 = arith.mulf %8, %13 : vector<200x128xf32>
    %15 = math.erf %14 : vector<200x128xf32>
    %cst_9 = arith.constant 1.000000e+00 : f32
    %16 = vector.broadcast %cst_9 : f32 to vector<200x128xf32>
    %17 = arith.addf %16, %15 : vector<200x128xf32>
    %18 = arith.mulf %10, %17 : vector<200x128xf32>
    %c0_10 = arith.constant 0 : index
    %c0_11 = arith.constant 0 : index
    %19 = vector.load %arg8[%c0_10, %c0_11] : memref<200x128xf32, #tpu.memory_space<vmem>>, vector<200x128xf32>
    %20 = arith.truncf %18 : vector<200x128xf32> to vector<200x128xbf16>
    %c0_12 = arith.constant 0 : index
    %c0_13 = arith.constant 0 : index
    %21 = vector.load %arg5[%c0_12, %c0_13] : memref<128x128xbf16, #tpu.memory_space<vmem>>, vector<128x128xbf16>
    %cst_14 = arith.constant dense<0.000000e+00> : vector<200x128xf32>
    %22 = tpu.matmul %20, %21, %cst_14 {dimension_numbers = #tpu.dot_dimension_numbers<[1], [0], [0], [1], [0, 0, 1, 1], [], []>} : vector<200x128xbf16>, vector<128x128xbf16>, vector<200x128xf32> -> vector<200x128xf32>
    %23 = arith.addf %19, %22 : vector<200x128xf32>
    %c0_15 = arith.constant 0 : index
    %c0_16 = arith.constant 0 : index
    %24 = vector.load %arg8[%c0_15, %c0_16] : memref<200x128xf32, #tpu.memory_space<vmem>>, vector<200x128xf32>
    tpu.vector_store %arg8[%c0_15, %c0_16], %23 {strides = array<i32>} : memref<200x128xf32, #tpu.memory_space<vmem>>, vector<200x128xf32>,
    %c0_i32_17 = arith.constant 0 : i32
    %25 = arith.cmpi eq, %arg1, %c0_i32_17 : i32
    %26 = arith.extui %25 : i1 to i32
    %c0_i32_18 = arith.constant 0 : i32
    %27 = arith.cmpi ne, %26, %c0_i32_18 : i32
    scf.if %27 {
      %c0_19 = arith.constant 0 : index
      %c0_20 = arith.constant 0 : index
      %28 = vector.load %arg8[%c0_19, %c0_20] : memref<200x128xf32, #tpu.memory_space<vmem>>, vector<200x128xf32>
      %c0_21 = arith.constant 0 : index
      %c0_22 = arith.constant 0 : index
      %29 = vector.load %arg6[%c0_21, %c0_22] : memref<1x128xf32, #tpu.memory_space<vmem>>, vector<1x128xf32>
      %30 = vector.broadcast %29 : vector<1x128xf32> to vector<200x128xf32>
      %31 = arith.addf %28, %30 : vector<200x128xf32>
      %c0_23 = arith.constant 0 : index
      %c0_24 = arith.constant 0 : index
      %32 = vector.load %arg7[%c0_23, %c0_24] : memref<200x128xf32, #tpu.memory_space<vmem>>, vector<200x128xf32>
      tpu.vector_store %arg7[%c0_23, %c0_24], %31 {strides = array<i32>} : memref<200x128xf32, #tpu.memory_space<vmem>>, vector<200x128xf32>,
    } else {
    }
    return
  }
  func.func @transform_0(%arg0: i32, %arg1: i32) -> (i32, i32) {
    %c0_i32 = arith.constant 0 : i32
    %c0_i32_0 = arith.constant 0 : i32
    return %arg0, %c0_i32 : i32, i32
  }
  func.func @transform_1(%arg0: i32, %arg1: i32) -> (i32, i32) {
    %c0_i32 = arith.constant 0 : i32
    %c0_i32_0 = arith.constant 0 : i32
    return %c0_i32, %arg1 : i32, i32
  }
  func.func @transform_2(%arg0: i32, %arg1: i32) -> (i32, i32) {
    %c0_i32 = arith.constant 0 : i32
    %c0_i32_0 = arith.constant 0 : i32
    return %c0_i32, %arg1 : i32, i32
  }
  func.func @transform_3(%arg0: i32, %arg1: i32) -> (i32, i32) {
    %c0_i32 = arith.constant 0 : i32
    %c0_i32_0 = arith.constant 0 : i32
    return %arg1, %c0_i32 : i32, i32
  }
  func.func @transform_4(%arg0: i32, %arg1: i32) -> (i32, i32) {
    %c0_i32 = arith.constant 0 : i32
    %c0_i32_0 = arith.constant 0 : i32
    %c0_i32_1 = arith.constant 0 : i32
    return %c0_i32, %c0_i32_0 : i32, i32
  }
  func.func @transform_5(%arg0: i32, %arg1: i32) -> (i32, i32) {
    %c0_i32 = arith.constant 0 : i32
    %c0_i32_0 = arith.constant 0 : i32
    return %arg0, %c0_i32 : i32, i32
  }
}

</mosaic_0001>

<bundles_post_ra>
// kernel: tpu_custom_call.1
= control target key start
LH: loop header
LB: loop body
LE: loop exit
PB: predicated region body
PF: predicated region fallthrough
CT: control target
= control target key end

     0   :  { %10 = vsyncpa [#allocation4], 0  ;;  %s1480_s0 = inlined_call_operand.hbm [shape: bf16[200,128], index: 0, kind: input, shape index: {}]   ;;  %s1481_s1 = inlined_call_operand.hbm [shape: bf16[128,128], index: 1, kind: input, shape index: {}]   ;;  %s1482_s2 = inlined_call_operand.vmem [shape: f32[1,128], index: 2, kind: input, shape index: {}]   ;;  %s1483_s3 = inlined_call_operand.hbm [shape: bf16[128,128], index: 3, kind: input, shape index: {}]   ;;  %s1484_s4 = inlined_call_operand.vmem [shape: f32[1,128], index: 4, kind: input, shape index: {}]   ;;  %s1485_s5 = inlined_call_operand.hbm [shape: f32[200,128], index: 5, kind: output, shape index: {}]  }
   0x1   :  { %11 = vsyncpa [#allocation7], 0 }
   0x2   :  { %12 = vsyncpa [#allocation5], 0  ;;  %s1300_s18 = smov [#allocation6]   ;;  %s1301_s20 = smov [#allocation3]  }
   0x3   :  { %s30_s19 = sshll.u32 %s1300_s18, 4  ;;  %s18_s21 = sshll.u32 %s1301_s20, 4  ;;  %s31_s19 = int_to_ptr.vmem [resolvable:$true] %s30_s19  ;;  %s19_s21 = int_to_ptr.vmem [resolvable:$true] %s18_s21 }
   0x4   :  { %s1222_s22 = scalar_lea.vmem %s31_s19, 1024  ;;  %p1227_p1 = scmp.lt.s32.totalorder %s31_s19, %s31_s19 }
   0x5   :  { %p1223_p0 = scmp.ne.s32.totalorder %s31_s19, %s1222_s22  ;;  %p1228_p2 = scmp.lt.s32.totalorder %s1222_s22, %s1222_s22 }
   0x7   :  { %p1229_p3 = por %p1228_p2, %p1227_p1 }
   0x9   :  { %p1230_p4 = pnand %p1229_p3, %p1223_p0 }
   0xb   :  { %1233 = shalt.err (!%p1230_p4)
}
   0xc   :  { %s1302_s23 = smov 64   ;;  %s1303_s24 = smov 4  }
   0xd   :  { %36 = dma.hbm_to_vmem [thread:$0]  %s1481_s1, 1024, %s31_s19, [#allocation7], %s1302_s23, %s1302_s23, %s1303_s24  }
   0xe   :  { %s1242_s27 = scalar_lea.vmem %s19_s21, 1600  ;;  %p1247_p6 = scmp.lt.s32.totalorder %s19_s21, %s19_s21 }
   0xf   :  { %p1243_p5 = scmp.ne.s32.totalorder %s19_s21, %s1242_s27  ;;  %p1248_p7 = scmp.lt.s32.totalorder %s1242_s27, %s1242_s27 }
  0x11   :  { %p1249_p8 = por %p1248_p7, %p1247_p6 }
  0x13   :  { %p1250_p9 = pnand %p1249_p8, %p1243_p5 }
  0x15   :  { %1253 = shalt.err (!%p1250_p9)
}
  0x16   :  { %24 = dma.hbm_to_vmem [thread:$0]  %s1480_s0, 1600, %s19_s21, [#allocation4], %s1302_s23, %s1302_s23, %s1303_s24  }
  0x17   :  { %s1304_s30 = smov [#allocation8]  }
  0x18   :  { %s44_s6 = sshll.u32 %s1304_s30, 4  ;;  %s45_s6 = int_to_ptr.vmem [resolvable:$true] %s44_s6 }
  0x19   :  { %s1262_s7 = scalar_lea.vmem %s45_s6, 1024  ;;  %p1267_p11 = scmp.lt.s32.totalorder %s45_s6, %s45_s6 }
  0x1a   :  { %p1263_p10 = scmp.ne.s32.totalorder %s45_s6, %s1262_s7  ;;  %p1268_p12 = scmp.lt.s32.totalorder %s1262_s7, %s1262_s7 }
  0x1c   :  { %p1269_p13 = por %p1268_p12, %p1267_p11 }
  0x1e   :  { %p1270_p0 = pnand %p1269_p13, %p1263_p10 }
  0x20   :  { %1273 = shalt.err (!%p1270_p0)
}
  0x21   :  { %50 = dma.hbm_to_vmem [thread:$0]  %s1483_s3, 1024, %s45_s6, [#allocation7], %s1302_s23, %s1302_s23, %s1303_s24  }
  0x22   :  { %1294 = dma.done.wait [#allocation4], 1600  }
  0x23   :  { %1295 = vsyncadd [#allocation4], 4294965696 }
  0x24   :  { %1296 = dma.done.wait [#allocation7], 2048  }
  0x25   :  { %1297 = vsyncadd [#allocation7], 4294965248  ;;  %v1305_v0 = vmov 0.0   ;;  %vm1306_vm0 = vmmov 0   ;;  %v1135_v1 = vld [vmem:[#allocation6 + $0x38] sm:$0xff]   ;;  %v1136_v2 = vld [vmem:[#allocation6 + $0x30] sm:$0xff]  }
  0x26   :  { %989 = vmatprep.subr.bf16.mxu0 %v1305_v0  ;;  %1005 = vmatprep.mubr.msk.bf16.mxu0 %vm1306_vm0, %v1305_v0  ;;  %v1137_v3 = vld [vmem:[#allocation6 + $0x28] sm:$0xff]   ;;  %v1138_v4 = vld [vmem:[#allocation6 + $0x20] sm:$0xff]   ;;  %v1139_v5 = vld [vmem:[#allocation6 + $0x18] sm:$0xff]  }
  0x27   :  { %1057 = vmatprep.subr.bf16.mxu1 %v1305_v0  ;;  %1073 = vmatprep.mubr.msk.bf16.mxu1 %vm1306_vm0, %v1305_v0  ;;  %v1140_v6 = vld [vmem:[#allocation6 + $0x10] sm:$0xff]   ;;  %v1141_v7 = vld [vmem:[#allocation6 + $0x8] sm:$0xff]   ;;  %v1156_v8 = vld [vmem:[#allocation8 + $0x38] sm:$0xff]  }
  0x28   :  { %990 = vmatpush3.bf16.msra.mxu0 %v1135_v1  ;;  %1058 = vmatpush3.bf16.msra.mxu1 %v1156_v8  ;;  %v1142_v9 = vld [vmem:[#allocation6] sm:$0xff]   ;;  %v1145_v12 = vld [vmem:[#allocation3 + $0x10] sm:$0xff]   ;;  %v1146_v13 = vld [vmem:[#allocation3 + $0x18] sm:$0xff]  }
  0x29   :  { %991 = vmatprep.subr.bf16.mxu0 %v1305_v0  ;;  %1059 = vmatprep.subr.bf16.mxu1 %v1305_v0  ;;  %v1143_v10 = vld [vmem:[#allocation3] sm:$0xff]   ;;  %v1144_v11 = vld [vmem:[#allocation3 + $0x8] sm:$0xff]   ;;  %v1149_v16 = vld [vmem:[#allocation3 + $0x30] sm:$0xff]  }
  0x2a   :  { %v1147_v14 = vld [vmem:[#allocation3 + $0x20] sm:$0xff]   ;;  %v1148_v15 = vld [vmem:[#allocation3 + $0x28] sm:$0xff]   ;;  %v1150_v17 = vld [vmem:[#allocation3 + $0x38] sm:$0xff]  }
  0x2b   :  { %v1151_v18 = vld [vmem:[#allocation3 + $0x40] sm:$0xff]   ;;  %v1157_v19 = vld [vmem:[#allocation8 + $0x30] sm:$0xff]   ;;  %v1152_v20 = vld [vmem:[#allocation3 + $0x48] sm:$0xff]  }
  0x2c   :  { %992 = vmatpush3.bf16.msra.mxu0 %v1136_v2  ;;  %1060 = vmatpush3.bf16.msra.mxu1 %v1157_v19  ;;  %v1158_v21 = vld [vmem:[#allocation8 + $0x28] sm:$0xff]   ;;  %v1159_v22 = vld [vmem:[#allocation8 + $0x20] sm:$0xff]   ;;  %v1160_v24 = vld [vmem:[#allocation8 + $0x18] sm:$0xff]  }
  0x2d   :  { %993 = vmatprep.subr.bf16.mxu0 %v1305_v0  ;;  %1061 = vmatprep.subr.bf16.mxu1 %v1305_v0  ;;  %v1153_v23 = vld [vmem:[#allocation3 + $0x50] sm:$0xff]   ;;  %v1154_v26 = vld [vmem:[#allocation3 + $0x58] sm:$0xff]   ;;  %v1163_v28 = vld [vmem:[#allocation8] sm:$0xff]  }
  0x2e   :  { %v1161_v25 = vld [vmem:[#allocation8 + $0x10] sm:$0xff]   ;;  %v1162_v27 = vld [vmem:[#allocation8 + $0x8] sm:$0xff]   ;;  %v1155_v29 = vld [vmem:[#allocation3 + $0x60] ss:$0 sps:$4 sm:$0xff]  }
  0x2f   :  { %v1396_v30 = vld [vmem:[%s1482_s2] ss:$0 sm:$0xff] }
  0x30   :  { %994 = vmatpush3.bf16.msra.mxu0 %v1137_v3  ;;  %1062 = vmatpush3.bf16.msra.mxu1 %v1158_v21 }
  0x31   :  { %995 = vmatprep.subr.bf16.mxu0 %v1305_v0  ;;  %1063 = vmatprep.subr.bf16.mxu1 %v1305_v0 }
  0x34   :  { %996 = vmatpush3.bf16.msra.mxu0 %v1138_v4  ;;  %1064 = vmatpush3.bf16.msra.mxu1 %v1159_v22 }
  0x35   :  { %997 = vmatprep.subr.bf16.mxu0 %v1305_v0  ;;  %1065 = vmatprep.subr.bf16.mxu1 %v1305_v0 }
  0x38   :  { %998 = vmatpush3.bf16.msra.mxu0 %v1139_v5  ;;  %1066 = vmatpush3.bf16.msra.mxu1 %v1160_v24 }
  0x39   :  { %999 = vmatprep.subr.bf16.mxu0 %v1305_v0  ;;  %1067 = vmatprep.subr.bf16.mxu1 %v1305_v0 }
  0x3c   :  { %1000 = vmatpush3.bf16.msra.mxu0 %v1140_v6  ;;  %1068 = vmatpush3.bf16.msra.mxu1 %v1161_v25 }
  0x3d   :  { %1001 = vmatprep.subr.bf16.mxu0 %v1305_v0  ;;  %1069 = vmatprep.subr.bf16.mxu1 %v1305_v0 }
  0x40   :  { %1002 = vmatpush3.bf16.msra.mxu0 %v1141_v7  ;;  %1070 = vmatpush3.bf16.msra.mxu1 %v1162_v27 }
  0x41   :  { %1003 = vmatprep.subr.bf16.mxu0 %v1305_v0  ;;  %1071 = vmatprep.subr.bf16.mxu1 %v1305_v0 }
  0x44   :  { %1004 = vmatpush3.bf16.msra.mxu0 %v1142_v9  ;;  %1072 = vmatpush3.bf16.msra.mxu1 %v1163_v28 }
  0x47   :  { %1006 = vmatmul.mubr.bf16.vlgmr.msra.gmra.mxu0 %v1143_v10 }
  0x48   :  { %1009 = vmatprep.mubr.msk.bf16.mxu0 %vm1306_vm0, %v1305_v0 }
  0x4f   :  { %1010 = vmatmul.mubr.bf16.gmra.mxu0 %v1144_v11 }
  0x50   :  { %1013 = vmatprep.mubr.msk.bf16.mxu0 %vm1306_vm0, %v1305_v0 }
  0x57   :  { %1014 = vmatmul.mubr.bf16.gmra.mxu0 %v1145_v12 }
  0x58   :  { %1017 = vmatprep.mubr.msk.bf16.mxu0 %vm1306_vm0, %v1305_v0 }
  0x5f   :  { %1018 = vmatmul.mubr.bf16.gmra.mxu0 %v1146_v13 }
  0x60   :  { %1021 = vmatprep.mubr.msk.bf16.mxu0 %vm1306_vm0, %v1305_v0 }
  0x67   :  { %1022 = vmatmul.mubr.bf16.gmra.mxu0 %v1147_v14 }
  0x68   :  { %1025 = vmatprep.mubr.msk.bf16.mxu0 %vm1306_vm0, %v1305_v0 }
  0x6f   :  { %1026 = vmatmul.mubr.bf16.gmra.mxu0 %v1148_v15 }
  0x70   :  { %1029 = vmatprep.mubr.msk.bf16.mxu0 %vm1306_vm0, %v1305_v0 }
  0x77   :  { %1030 = vmatmul.mubr.bf16.gmra.mxu0 %v1149_v16 }
  0x78   :  { %1033 = vmatprep.mubr.msk.bf16.mxu0 %vm1306_vm0, %v1305_v0 }
  0x7f   :  { %1034 = vmatmul.mubr.bf16.gmra.mxu0 %v1150_v17 }
  0x80   :  { %1037 = vmatprep.mubr.msk.bf16.mxu0 %vm1306_vm0, %v1305_v0 }
  0x87   :  { %1038 = vmatmul.mubr.bf16.gmra.mxu0 %v1151_v18 }
  0x88   :  { %1041 = vmatprep.mubr.msk.bf16.mxu0 %vm1306_vm0, %v1305_v0 }
  0x8f   :  { %1042 = vmatmul.mubr.bf16.gmra.mxu0 %v1152_v20 }
  0x90   :  { %1045 = vmatprep.mubr.msk.bf16.mxu0 %vm1306_vm0, %v1305_v0 }
  0x97   :  { %1046 = vmatmul.mubr.bf16.gmra.mxu0 %v1153_v23 }
  0x98   :  { %1049 = vmatprep.mubr.msk.bf16.mxu0 %vm1306_vm0, %v1305_v0 }
  0x9f   :  { %1050 = vmatmul.mubr.bf16.gmra.mxu0 %v1154_v26 }
  0xa0   :  { %1053 = vmatprep.mubr.msk.bf16.mxu0 %vm1306_vm0, %v1305_v0 }
  0xa7   :  { %1054 = vmatmul.mubr.bf16.gmra.mxu0 %v1155_v29 }
 0x107   :  { %v298_v31 = vpop.f32.mrf.mxu0 }
 0x108   :  { %v299_v32 = vadd.f32 %v1396_v30, %v298_v31 }
 0x109   :  { %v1007_v33 = vpop.f32.mrf.mxu0 }
 0x10a   :  { %v425_v34 = vmul.f32 0.70710677, %v299_v32  ;;  %v400_v57 = vmul.f32 0.5, %v299_v32 }
 0x10b   :  { %v301_v35 = vpop.f32.mrf.mxu0 }
 0x10c   :  { %1164 = verf.f32 %v425_v34  ;;  %v302_v36 = vadd.f32 %v1396_v30, %v301_v35 }
 0x10d   :  { %v1008_v37 = vpop.f32.mrf.mxu0 }
 0x10e   :  { %v426_v38 = vmul.f32 0.70710677, %v302_v36  ;;  %v401_v58 = vmul.f32 0.5, %v302_v36 }
 0x10f   :  { %v306_v39 = vpop.f32.mrf.mxu0 }
 0x110   :  { %1166 = verf.f32 %v426_v38  ;;  %v307_v40 = vadd.f32 %v1396_v30, %v306_v39 }
 0x111   :  { %v1011_v41 = vpop.f32.mrf.mxu0 }
 0x112   :  { %v427_v42 = vmul.f32 0.70710677, %v307_v40  ;;  %v402_v11 = vmul.f32 0.5, %v307_v40 }
 0x113   :  { %v309_v43 = vpop.f32.mrf.mxu0 }
 0x114   :  { %1168 = verf.f32 %v427_v42  ;;  %v310_v44 = vadd.f32 %v1396_v30, %v309_v43 }
 0x115   :  { %v1012_v45 = vpop.f32.mrf.mxu0 }
 0x116   :  { %v428_v46 = vmul.f32 0.70710677, %v310_v44  ;;  %v403_v12 = vmul.f32 0.5, %v310_v44 }
 0x117   :  { %v314_v47 = vpop.f32.mrf.mxu0 }
 0x118   :  { %1170 = verf.f32 %v428_v46  ;;  %v315_v48 = vadd.f32 %v1396_v30, %v314_v47 }
 0x119   :  { %v1165_v49 = vpop.eup %1164  ;;  %v1015_v50 = vpop.f32.mrf.mxu0 }
 0x11a   :  { %v429_v51 = vmul.f32 0.70710677, %v315_v48  ;;  %v475_v53 = vadd.f32 1.0, %v1165_v49  ;;  %v404_v28 = vmul.f32 0.5, %v315_v48 }
 0x11b   :  { %v317_v52 = vpop.f32.mrf.mxu0 }
 0x11c   :  { %1172 = verf.f32 %v429_v51  ;;  %v318_v54 = vadd.f32 %v1396_v30, %v317_v52  ;;  %v500_v62 = vmul.f32 %v475_v53, %v400_v57 }
 0x11d   :  { %v1167_v55 = vpop.eup %1166  ;;  %v1016_v56 = vpop.f32.mrf.mxu0 }
 0x11e   :  { %v476_v59 = vadd.f32 1.0, %v1167_v55  ;;  %v430_v60 = vmul.f32 0.70710677, %v318_v54  ;;  %v405_v29 = vmul.f32 0.5, %v318_v54 }
 0x11f   :  { %v322_v61 = vpop.f32.mrf.mxu0 }
 0x120   :  { %v501_v63 = vmul.f32 %v476_v59, %v401_v58  ;;  %1174 = verf.f32 %v430_v60  ;;  %v323_v1 = vadd.f32 %v1396_v30, %v322_v61 }
 0x121   :  { %v1169_v2 = vpop.eup %1168  ;;  %v1019_v3 = vpop.f32.mrf.mxu0 }
 0x122   :  { %v431_v4 = vmul.f32 0.70710677, %v323_v1  ;;  %v550_v5 = vpack.c.bf16 %v501_v63, %v500_v62  ;;  %v477_v7 = vadd.f32 1.0, %v1169_v2  ;;  %v406_v46 = vmul.f32 0.5, %v323_v1 }
 0x123   :  { %v325_v6 = vpop.f32.mrf.mxu0 }
 0x124   :  { %1176 = verf.f32 %v431_v4  ;;  %v326_v8 = vadd.f32 %v1396_v30, %v325_v6  ;;  %1074 = vmatmul.mubr.bf16.vlgmr.msra.gmra.mxu1 %v550_v5  ;;  %v502_v16 = vmul.f32 %v477_v7, %v402_v11 }
 0x125   :  { %v1171_v9 = vpop.eup %1170  ;;  %v1020_v10 = vpop.f32.mrf.mxu0  ;;  %1077 = vmatprep.mubr.msk.bf16.mxu1 %vm1306_vm0, %v1305_v0 }
 0x126   :  { %v478_v13 = vadd.f32 1.0, %v1171_v9  ;;  %v432_v14 = vmul.f32 0.70710677, %v326_v8  ;;  %v407_v47 = vmul.f32 0.5, %v326_v8 }
 0x127   :  { %v330_v15 = vpop.f32.mrf.mxu0 }
 0x128   :  { %v503_v17 = vmul.f32 %v478_v13, %v403_v12  ;;  %1178 = verf.f32 %v432_v14  ;;  %v331_v18 = vadd.f32 %v1396_v30, %v330_v15 }
 0x129   :  { %v1173_v19 = vpop.eup %1172  ;;  %v1023_v20 = vpop.f32.mrf.mxu0 }
 0x12a   :  { %v433_v21 = vmul.f32 0.70710677, %v331_v18  ;;  %v551_v22 = vpack.c.bf16 %v503_v17, %v502_v16  ;;  %v479_v24 = vadd.f32 1.0, %v1173_v19  ;;  %v408_v63 = vmul.f32 0.5, %v331_v18 }
 0x12b   :  { %v333_v23 = vpop.f32.mrf.mxu0 }
 0x12c   :  { %1180 = verf.f32 %v433_v21  ;;  %v334_v25 = vadd.f32 %v1396_v30, %v333_v23  ;;  %1078 = vmatmul.mubr.bf16.gmra.mxu1 %v551_v22  ;;  %v504_v34 = vmul.f32 %v479_v24, %v404_v28 }
 0x12d   :  { %v1175_v26 = vpop.eup %1174  ;;  %v1024_v27 = vpop.f32.mrf.mxu0  ;;  %1081 = vmatprep.mubr.msk.bf16.mxu1 %vm1306_vm0, %v1305_v0 }
 0x12e   :  { %v480_v31 = vadd.f32 1.0, %v1175_v26  ;;  %v434_v32 = vmul.f32 0.70710677, %v334_v25  ;;  %v409_v1 = vmul.f32 0.5, %v334_v25 }
 0x12f   :  { %v338_v33 = vpop.f32.mrf.mxu0 }
 0x130   :  { %v505_v35 = vmul.f32 %v480_v31, %v405_v29  ;;  %1182 = verf.f32 %v434_v32  ;;  %v339_v36 = vadd.f32 %v1396_v30, %v338_v33 }
 0x131   :  { %v1177_v37 = vpop.eup %1176  ;;  %v1027_v38 = vpop.f32.mrf.mxu0 }
 0x132   :  { %v435_v39 = vmul.f32 0.70710677, %v339_v36  ;;  %v552_v40 = vpack.c.bf16 %v505_v35, %v504_v34  ;;  %v481_v42 = vadd.f32 1.0, %v1177_v37  ;;  %v410_v17 = vmul.f32 0.5, %v339_v36 }
 0x133   :  { %v341_v41 = vpop.f32.mrf.mxu0 }
 0x134   :  { %1184 = verf.f32 %v435_v39  ;;  %v342_v43 = vadd.f32 %v1396_v30, %v341_v41  ;;  %1082 = vmatmul.mubr.bf16.gmra.mxu1 %v552_v40  ;;  %v506_v51 = vmul.f32 %v481_v42, %v406_v46 }
 0x135   :  { %v1179_v44 = vpop.eup %1178  ;;  %v1028_v45 = vpop.f32.mrf.mxu0  ;;  %1085 = vmatprep.mubr.msk.bf16.mxu1 %vm1306_vm0, %v1305_v0 }
 0x136   :  { %v482_v48 = vadd.f32 1.0, %v1179_v44  ;;  %v436_v49 = vmul.f32 0.70710677, %v342_v43  ;;  %v411_v18 = vmul.f32 0.5, %v342_v43 }
 0x137   :  { %v346_v50 = vpop.f32.mrf.mxu0 }
 0x138   :  { %v507_v52 = vmul.f32 %v482_v48, %v407_v47  ;;  %1186 = verf.f32 %v436_v49  ;;  %v347_v53 = vadd.f32 %v1396_v30, %v346_v50 }
 0x139   :  { %v1181_v54 = vpop.eup %1180  ;;  %v1031_v55 = vpop.f32.mrf.mxu0 }
 0x13a   :  { %v437_v56 = vmul.f32 0.70710677, %v347_v53  ;;  %v553_v57 = vpack.c.bf16 %v507_v52, %v506_v51  ;;  %v483_v59 = vadd.f32 1.0, %v1181_v54  ;;  %v412_v35 = vmul.f32 0.5, %v347_v53 }
 0x13b   :  { %v349_v58 = vpop.f32.mrf.mxu0 }
 0x13c   :  { %1188 = verf.f32 %v437_v56  ;;  %v350_v60 = vadd.f32 %v1396_v30, %v349_v58  ;;  %1086 = vmatmul.mubr.bf16.gmra.mxu1 %v553_v57  ;;  %v508_v5 = vmul.f32 %v483_v59, %v408_v63 }
 0x13d   :  { %v1183_v61 = vpop.eup %1182  ;;  %v1032_v62 = vpop.f32.mrf.mxu0  ;;  %1089 = vmatprep.mubr.msk.bf16.mxu1 %vm1306_vm0, %v1305_v0 }
 0x13e   :  { %v484_v2 = vadd.f32 1.0, %v1183_v61  ;;  %v438_v3 = vmul.f32 0.70710677, %v350_v60  ;;  %v413_v36 = vmul.f32 0.5, %v350_v60 }
 0x13f   :  { %v354_v4 = vpop.f32.mrf.mxu0 }
 0x140   :  { %v509_v6 = vmul.f32 %v484_v2, %v409_v1  ;;  %1190 = verf.f32 %v438_v3  ;;  %v355_v7 = vadd.f32 %v1396_v30, %v354_v4 }
 0x141   :  { %v1185_v8 = vpop.eup %1184  ;;  %v1035_v9 = vpop.f32.mrf.mxu0 }
 0x142   :  { %v439_v10 = vmul.f32 0.70710677, %v355_v7  ;;  %v554_v11 = vpack.c.bf16 %v509_v6, %v508_v5  ;;  %v485_v13 = vadd.f32 1.0, %v1185_v8  ;;  %v414_v52 = vmul.f32 0.5, %v355_v7 }
 0x143   :  { %v357_v12 = vpop.f32.mrf.mxu0 }
 0x144   :  { %1192 = verf.f32 %v439_v10  ;;  %v358_v14 = vadd.f32 %v1396_v30, %v357_v12  ;;  %1090 = vmatmul.mubr.bf16.gmra.mxu1 %v554_v11  ;;  %v510_v22 = vmul.f32 %v485_v13, %v410_v17 }
 0x145   :  { %v1187_v15 = vpop.eup %1186  ;;  %v1036_v16 = vpop.f32.mrf.mxu0  ;;  %1093 = vmatprep.mubr.msk.bf16.mxu1 %vm1306_vm0, %v1305_v0 }
 0x146   :  { %v486_v19 = vadd.f32 1.0, %v1187_v15  ;;  %v440_v20 = vmul.f32 0.70710677, %v358_v14  ;;  %v415_v53 = vmul.f32 0.5, %v358_v14 }
 0x147   :  { %v362_v21 = vpop.f32.mrf.mxu0 }
 0x148   :  { %v511_v23 = vmul.f32 %v486_v19, %v411_v18  ;;  %1194 = verf.f32 %v440_v20  ;;  %v363_v24 = vadd.f32 %v1396_v30, %v362_v21 }
 0x149   :  { %v1189_v25 = vpop.eup %1188  ;;  %v1039_v26 = vpop.f32.mrf.mxu0 }
 0x14a   :  { %v441_v27 = vmul.f32 0.70710677, %v363_v24  ;;  %v555_v28 = vpack.c.bf16 %v511_v23, %v510_v22  ;;  %v487_v31 = vadd.f32 1.0, %v1189_v25  ;;  %v416_v6 = vmul.f32 0.5, %v363_v24 }
 0x14b   :  { %v365_v29 = vpop.f32.mrf.mxu0 }
 0x14c   :  { %1196 = verf.f32 %v441_v27  ;;  %v366_v32 = vadd.f32 %v1396_v30, %v365_v29  ;;  %1094 = vmatmul.mubr.bf16.gmra.mxu1 %v555_v28  ;;  %v512_v40 = vmul.f32 %v487_v31, %v412_v35 }
 0x14d   :  { %v1191_v33 = vpop.eup %1190  ;;  %v1040_v34 = vpop.f32.mrf.mxu0  ;;  %1097 = vmatprep.mubr.msk.bf16.mxu1 %vm1306_vm0, %v1305_v0 }
 0x14e   :  { %v488_v37 = vadd.f32 1.0, %v1191_v33  ;;  %v442_v38 = vmul.f32 0.70710677, %v366_v32  ;;  %v417_v7 = vmul.f32 0.5, %v366_v32 }
 0x14f   :  { %v370_v39 = vpop.f32.mrf.mxu0 }
 0x150   :  { %v513_v41 = vmul.f32 %v488_v37, %v413_v36  ;;  %1198 = verf.f32 %v442_v38  ;;  %v371_v42 = vadd.f32 %v1396_v30, %v370_v39 }
 0x151   :  { %v1193_v43 = vpop.eup %1192  ;;  %v1043_v44 = vpop.f32.mrf.mxu0 }
 0x152   :  { %v443_v45 = vmul.f32 0.70710677, %v371_v42  ;;  %v556_v46 = vpack.c.bf16 %v513_v41, %v512_v40  ;;  %v489_v48 = vadd.f32 1.0, %v1193_v43  ;;  %v418_v23 = vmul.f32 0.5, %v371_v42 }
 0x153   :  { %v373_v47 = vpop.f32.mrf.mxu0 }
 0x154   :  { %1200 = verf.f32 %v443_v45  ;;  %v374_v49 = vadd.f32 %v1396_v30, %v373_v47  ;;  %1098 = vmatmul.mubr.bf16.gmra.mxu1 %v556_v46  ;;  %v514_v57 = vmul.f32 %v489_v48, %v414_v52 }
 0x155   :  { %v1195_v50 = vpop.eup %1194  ;;  %v1044_v51 = vpop.f32.mrf.mxu0  ;;  %1101 = vmatprep.mubr.msk.bf16.mxu1 %vm1306_vm0, %v1305_v0 }
 0x156   :  { %v490_v54 = vadd.f32 1.0, %v1195_v50  ;;  %v444_v55 = vmul.f32 0.70710677, %v374_v49  ;;  %v419_v24 = vmul.f32 0.5, %v374_v49 }
 0x157   :  { %v378_v56 = vpop.f32.mrf.mxu0 }
 0x158   :  { %v515_v58 = vmul.f32 %v490_v54, %v415_v53  ;;  %1202 = verf.f32 %v444_v55  ;;  %v379_v59 = vadd.f32 %v1396_v30, %v378_v56 }
 0x159   :  { %v1197_v60 = vpop.eup %1196  ;;  %v1047_v61 = vpop.f32.mrf.mxu0 }
 0x15a   :  { %v445_v62 = vmul.f32 0.70710677, %v379_v59  ;;  %v557_v63 = vpack.c.bf16 %v515_v58, %v514_v57  ;;  %v491_v2 = vadd.f32 1.0, %v1197_v60  ;;  %v420_v40 = vmul.f32 0.5, %v379_v59  ;;  %v1450_v59 = vld [vmem:[%s1484_s4] ss:$0 sm:$0xff] }
 0x15b   :  { %v381_v1 = vpop.f32.mrf.mxu0  ;;  %s1307_s4 = smov [#allocation9]  }
 0x15c   :  { %1204 = verf.f32 %v445_v62  ;;  %v382_v3 = vadd.f32 %v1396_v30, %v381_v1  ;;  %1102 = vmatmul.mubr.bf16.gmra.mxu1 %v557_v63  ;;  %v516_v11 = vmul.f32 %v491_v2, %v416_v6  ;;  %s903_s10 = sshll.u32 %s1307_s4, 4  ;;  %s904_s10 = int_to_ptr.vmem [resolvable:$true] %s903_s10 }
 0x15d   :  { %v1199_v4 = vpop.eup %1198  ;;  %v1048_v5 = vpop.f32.mrf.mxu0  ;;  %1105 = vmatprep.mubr.msk.bf16.mxu1 %vm1306_vm0, %v1305_v0  ;;  %s1274_s11 = scalar_lea.vmem %s904_s10, 3200  ;;  %p1279_p2 = scmp.lt.s32.totalorder %s904_s10, %s904_s10 }
 0x15e   :  { %v492_v8 = vadd.f32 1.0, %v1199_v4  ;;  %v446_v9 = vmul.f32 0.70710677, %v382_v3  ;;  %v421_v41 = vmul.f32 0.5, %v382_v3  ;;  %p1275_p1 = scmp.ne.s32.totalorder %s904_s10, %s1274_s11  ;;  %p1280_p3 = scmp.lt.s32.totalorder %s1274_s11, %s1274_s11 }
 0x15f   :  { %v386_v10 = vpop.f32.mrf.mxu0 }
 0x160   :  { %v517_v12 = vmul.f32 %v492_v8, %v417_v7  ;;  %1206 = verf.f32 %v446_v9  ;;  %v387_v13 = vadd.f32 %v1396_v30, %v386_v10  ;;  %p1281_p4 = por %p1280_p3, %p1279_p2 }
 0x161   :  { %v1201_v14 = vpop.eup %1200  ;;  %v1051_v15 = vpop.f32.mrf.mxu0 }
 0x162   :  { %v447_v16 = vmul.f32 0.70710677, %v387_v13  ;;  %v558_v17 = vpack.c.bf16 %v517_v12, %v516_v11  ;;  %v493_v19 = vadd.f32 1.0, %v1201_v14  ;;  %v422_v48 = vmul.f32 0.5, %v387_v13  ;;  %p1282_p5 = pnand %p1281_p4, %p1275_p1 }
 0x163   :  { %v389_v18 = vpop.f32.mrf.mxu0 }
 0x164   :  { %1208 = verf.f32 %v447_v16  ;;  %v390_v20 = vadd.f32 %v1396_v30, %v389_v18  ;;  %1106 = vmatmul.mubr.bf16.gmra.mxu1 %v558_v17  ;;  %v518_v28 = vmul.f32 %v493_v19, %v418_v23 }
 0x165   :  { %v1203_v21 = vpop.eup %1202  ;;  %v1052_v22 = vpop.f32.mrf.mxu0  ;;  %1109 = vmatprep.mubr.msk.bf16.mxu1 %vm1306_vm0, %v1305_v0 }
 0x166   :  { %v494_v25 = vadd.f32 1.0, %v1203_v21  ;;  %v448_v26 = vmul.f32 0.70710677, %v390_v20  ;;  %v423_v49 = vmul.f32 0.5, %v390_v20 }
 0x167   :  { %v394_v27 = vpop.f32.mrf.mxu0 }
 0x168   :  { %v519_v29 = vmul.f32 %v494_v25, %v419_v24  ;;  %1210 = verf.f32 %v448_v26  ;;  %v395_v31 = vadd.f32 %v1396_v30, %v394_v27 }
 0x169   :  { %v1205_v32 = vpop.eup %1204  ;;  %v1055_v33 = vpop.f32.mrf.mxu0 }
 0x16a   :  { %v449_v34 = vmul.f32 0.70710677, %v395_v31  ;;  %v559_v35 = vpack.c.bf16 %v519_v29, %v518_v28  ;;  %v495_v37 = vadd.f32 1.0, %v1205_v32  ;;  %v424_v56 = vmul.f32 0.5, %v395_v31 }
 0x16b   :  { %v397_v36 = vpop.f32.mrf.mxu0 }
 0x16c   :  { %1212 = verf.f32 %v449_v34  ;;  %1110 = vmatmul.mubr.bf16.gmra.mxu1 %v559_v35  ;;  %v520_v43 = vmul.f32 %v495_v37, %v420_v40 }
 0x16d   :  { %v1207_v38 = vpop.eup %1206  ;;  %v1056_v39 = vpop.f32.mrf.mxu0  ;;  %1113 = vmatprep.mubr.msk.bf16.mxu1 %vm1306_vm0, %v1305_v0 }
 0x16e   :  { %v496_v42 = vadd.f32 1.0, %v1207_v38 }
 0x170   :  { %v521_v44 = vmul.f32 %v496_v42, %v421_v41 }
 0x171   :  { %v1209_v45 = vpop.eup %1208 }
 0x172   :  { %v560_v30 = vpack.c.bf16 %v521_v44, %v520_v43  ;;  %v497_v46 = vadd.f32 1.0, %v1209_v45 }
 0x174   :  { %1114 = vmatmul.mubr.bf16.gmra.mxu1 %v560_v30  ;;  %v522_v51 = vmul.f32 %v497_v46, %v422_v48 }
 0x175   :  { %v1211_v47 = vpop.eup %1210  ;;  %1117 = vmatprep.mubr.msk.bf16.mxu1 %vm1306_vm0, %v1305_v0 }
 0x176   :  { %v498_v50 = vadd.f32 1.0, %v1211_v47 }
 0x178   :  { %v523_v52 = vmul.f32 %v498_v50, %v423_v49 }
 0x179   :  { %v1213_v53 = vpop.eup %1212 }
 0x17a   :  { %v561_v54 = vpack.c.bf16 %v523_v52, %v522_v51  ;;  %v499_v55 = vadd.f32 1.0, %v1213_v53 }
 0x17c   :  { %1118 = vmatmul.mubr.bf16.gmra.mxu1 %v561_v54  ;;  %v524_v57 = vmul.f32 %v499_v55, %v424_v56 }
 0x17d   :  { %1121 = vmatprep.mubr.msk.bf16.mxu1 %vm1306_vm0, %v1305_v0 }
 0x17e   :  { %v562_v58 = vpack.c.bf16 %v524_v57, %v524_v57 }
 0x184   :  { %1122 = vmatmul.mubr.bf16.gmra.mxu1 %v562_v58 }
 0x1e4   :  { %v661_v60 = vpop.f32.mrf.mxu1 }
 0x1e5   :  { %v848_v61 = vadd.f32 %v1450_v59, %v661_v60 }
 0x1e6   :  { %v1075_v62 = vpop.f32.mrf.mxu1 }
 0x1e7   :  { %873 = vst [vmem:[#allocation9] sm:$0xff] %v848_v61 }
 0x1e8   :  { %v664_v63 = vpop.f32.mrf.mxu1 }
 0x1e9   :  { %v849_v1 = vadd.f32 %v1450_v59, %v664_v63 }
 0x1ea   :  { %v1076_v2 = vpop.f32.mrf.mxu1 }
 0x1eb   :  { %874 = vst [vmem:[#allocation9 + $0x8] sm:$0xff] %v849_v1 }
 0x1ec   :  { %v669_v3 = vpop.f32.mrf.mxu1 }
 0x1ed   :  { %v850_v0 = vadd.f32 %v1450_v59, %v669_v3 }
 0x1ee   :  { %v1079_v4 = vpop.f32.mrf.mxu1 }
 0x1ef   :  { %875 = vst [vmem:[#allocation9 + $0x10] sm:$0xff] %v850_v0 }
 0x1f0   :  { %v672_v5 = vpop.f32.mrf.mxu1 }
 0x1f1   :  { %v851_v6 = vadd.f32 %v1450_v59, %v672_v5 }
 0x1f2   :  { %v1080_v7 = vpop.f32.mrf.mxu1 }
 0x1f3   :  { %876 = vst [vmem:[#allocation9 + $0x18] sm:$0xff] %v851_v6 }
 0x1f4   :  { %v677_v8 = vpop.f32.mrf.mxu1 }
 0x1f5   :  { %v852_v9 = vadd.f32 %v1450_v59, %v677_v8 }
 0x1f6   :  { %v1083_v10 = vpop.f32.mrf.mxu1 }
 0x1f7   :  { %877 = vst [vmem:[#allocation9 + $0x20] sm:$0xff] %v852_v9 }
 0x1f8   :  { %v680_v11 = vpop.f32.mrf.mxu1 }
 0x1f9   :  { %v853_v12 = vadd.f32 %v1450_v59, %v680_v11 }
 0x1fa   :  { %v1084_v13 = vpop.f32.mrf.mxu1 }
 0x1fb   :  { %878 = vst [vmem:[#allocation9 + $0x28] sm:$0xff] %v853_v12 }
 0x1fc   :  { %v685_v14 = vpop.f32.mrf.mxu1 }
 0x1fd   :  { %v854_v15 = vadd.f32 %v1450_v59, %v685_v14 }
 0x1fe   :  { %v1087_v16 = vpop.f32.mrf.mxu1 }
 0x1ff   :  { %879 = vst [vmem:[#allocation9 + $0x30] sm:$0xff] %v854_v15 }
 0x200   :  { %v688_v17 = vpop.f32.mrf.mxu1 }
 0x201   :  { %v855_v18 = vadd.f32 %v1450_v59, %v688_v17 }
 0x202   :  { %v1088_v19 = vpop.f32.mrf.mxu1 }
 0x203   :  { %880 = vst [vmem:[#allocation9 + $0x38] sm:$0xff] %v855_v18 }
 0x204   :  { %v693_v20 = vpop.f32.mrf.mxu1 }
 0x205   :  { %v856_v21 = vadd.f32 %v1450_v59, %v693_v20 }
 0x206   :  { %v1091_v22 = vpop.f32.mrf.mxu1 }
 0x207   :  { %881 = vst [vmem:[#allocation9 + $0x40] sm:$0xff] %v856_v21 }
 0x208   :  { %v696_v23 = vpop.f32.mrf.mxu1 }
 0x209   :  { %v857_v24 = vadd.f32 %v1450_v59, %v696_v23 }
 0x20a   :  { %v1092_v25 = vpop.f32.mrf.mxu1 }
 0x20b   :  { %882 = vst [vmem:[#allocation9 + $0x48] sm:$0xff] %v857_v24 }
 0x20c   :  { %v701_v26 = vpop.f32.mrf.mxu1 }
 0x20d   :  { %v858_v27 = vadd.f32 %v1450_v59, %v701_v26 }
 0x20e   :  { %v1095_v28 = vpop.f32.mrf.mxu1 }
 0x20f   :  { %883 = vst [vmem:[#allocation9 + $0x50] sm:$0xff] %v858_v27 }
 0x210   :  { %v704_v29 = vpop.f32.mrf.mxu1 }
 0x211   :  { %v859_v31 = vadd.f32 %v1450_v59, %v704_v29 }
 0x212   :  { %v1096_v32 = vpop.f32.mrf.mxu1 }
 0x213   :  { %884 = vst [vmem:[#allocation9 + $0x58] sm:$0xff] %v859_v31 }
 0x214   :  { %v709_v33 = vpop.f32.mrf.mxu1 }
 0x215   :  { %v860_v34 = vadd.f32 %v1450_v59, %v709_v33 }
 0x216   :  { %v1099_v35 = vpop.f32.mrf.mxu1 }
 0x217   :  { %885 = vst [vmem:[#allocation9 + $0x60] sm:$0xff] %v860_v34 }
 0x218   :  { %v712_v36 = vpop.f32.mrf.mxu1 }
 0x219   :  { %v861_v37 = vadd.f32 %v1450_v59, %v712_v36 }
 0x21a   :  { %v1100_v38 = vpop.f32.mrf.mxu1 }
 0x21b   :  { %886 = vst [vmem:[#allocation9 + $0x68] sm:$0xff] %v861_v37 }
 0x21c   :  { %v717_v39 = vpop.f32.mrf.mxu1 }
 0x21d   :  { %v862_v40 = vadd.f32 %v1450_v59, %v717_v39 }
 0x21e   :  { %v1103_v41 = vpop.f32.mrf.mxu1 }
 0x21f   :  { %887 = vst [vmem:[#allocation9 + $0x70] sm:$0xff] %v862_v40 }
 0x220   :  { %v720_v42 = vpop.f32.mrf.mxu1 }
 0x221   :  { %v863_v43 = vadd.f32 %v1450_v59, %v720_v42 }
 0x222   :  { %v1104_v44 = vpop.f32.mrf.mxu1 }
 0x223   :  { %888 = vst [vmem:[#allocation9 + $0x78] sm:$0xff] %v863_v43 }
 0x224   :  { %v725_v45 = vpop.f32.mrf.mxu1 }
 0x225   :  { %v864_v30 = vadd.f32 %v1450_v59, %v725_v45 }
 0x226   :  { %v1107_v46 = vpop.f32.mrf.mxu1 }
 0x227   :  { %889 = vst [vmem:[#allocation9 + $0x80] sm:$0xff] %v864_v30 }
 0x228   :  { %v728_v47 = vpop.f32.mrf.mxu1 }
 0x229   :  { %v865_v48 = vadd.f32 %v1450_v59, %v728_v47 }
 0x22a   :  { %v1108_v49 = vpop.f32.mrf.mxu1 }
 0x22b   :  { %890 = vst [vmem:[#allocation9 + $0x88] sm:$0xff] %v865_v48 }
 0x22c   :  { %v733_v50 = vpop.f32.mrf.mxu1 }
 0x22d   :  { %v866_v51 = vadd.f32 %v1450_v59, %v733_v50 }
 0x22e   :  { %v1111_v52 = vpop.f32.mrf.mxu1 }
 0x22f   :  { %891 = vst [vmem:[#allocation9 + $0x90] sm:$0xff] %v866_v51 }
 0x230   :  { %v736_v53 = vpop.f32.mrf.mxu1 }
 0x231   :  { %v867_v54 = vadd.f32 %v1450_v59, %v736_v53 }
 0x232   :  { %v1112_v55 = vpop.f32.mrf.mxu1 }
 0x233   :  { %892 = vst [vmem:[#allocation9 + $0x98] sm:$0xff] %v867_v54 }
 0x234   :  { %v741_v56 = vpop.f32.mrf.mxu1 }
 0x235   :  { %v868_v57 = vadd.f32 %v1450_v59, %v741_v56 }
 0x236   :  { %v1115_v58 = vpop.f32.mrf.mxu1 }
 0x237   :  { %893 = vst [vmem:[#allocation9 + $0xa0] sm:$0xff] %v868_v57 }
 0x238   :  { %v744_v60 = vpop.f32.mrf.mxu1 }
 0x239   :  { %v869_v61 = vadd.f32 %v1450_v59, %v744_v60 }
 0x23a   :  { %v1116_v62 = vpop.f32.mrf.mxu1 }
 0x23b   :  { %894 = vst [vmem:[#allocation9 + $0xa8] sm:$0xff] %v869_v61 }
 0x23c   :  { %v749_v63 = vpop.f32.mrf.mxu1 }
 0x23d   :  { %v870_v1 = vadd.f32 %v1450_v59, %v749_v63 }
 0x23e   :  { %v1119_v2 = vpop.f32.mrf.mxu1 }
 0x23f   :  { %895 = vst [vmem:[#allocation9 + $0xb0] sm:$0xff] %v870_v1 }
 0x240   :  { %v752_v3 = vpop.f32.mrf.mxu1 }
 0x241   :  { %v871_v0 = vadd.f32 %v1450_v59, %v752_v3 }
 0x242   :  { %v1120_v4 = vpop.f32.mrf.mxu1 }
 0x243   :  { %896 = vst [vmem:[#allocation9 + $0xb8] sm:$0xff] %v871_v0 }
 0x244   :  { %v757_v5 = vpop.f32.mrf.mxu1 }
 0x245   :  { %v872_v6 = vadd.f32 %v1450_v59, %v757_v5 }
 0x246   :  { %v1123_v7 = vpop.f32.mrf.mxu1 }
 0x247   :  { %897 = vst [vmem:[#allocation9 + $0xc0] sm:$0xff] %v872_v6 }
 0x248   :  { %v760_v8 = vpop.f32.mrf.mxu1 }
 0x249   :  { %1285 = shalt.err (!%p1282_p5)
}
 0x24a   :  { %s1308_s12 = smov 128   ;;  %s1309_s13 = smov 8   ;;  %v1124_v9 = vpop.f32.mrf.mxu1 }
 0x24b   :  { %909 = dma.vmem_to_hbm [thread:$0]  %s904_s10, 3200, %s1485_s5, [#allocation5], %s1308_s12, %s1308_s12, %s1309_s13  }
 0x24c   :  { %1298 = dma.done.wait [#allocation5], 3200  }
 0x24d   :  { %1299 = vsyncadd [#allocation5], 4294964096 }
 0x24e   :  { %913 = vsyncpa [#allocation4], 1 }
 0x24f   :  { %914 = vsyncpa [#allocation7], 1 }
 0x250   :  { %915 = vsyncpa [#allocation5], 1 }

</bundles_post_ra>
